<compile_context>
chip_gen: v7x
topology: tpu7x:2x2x1
jax: 0.10.0
libtpu: 0.0.40
codegen_flags: <defaults>
</compile_context>

<pallas_src>
import jax
import jax.numpy as jnp
from jax import lax
from jax.experimental import pallas as pl
from jax.experimental.pallas import tpu as pltpu


def linear_kernel(x_ref, w_ref, b_ref, o_ref):
    k = pl.program_id(2)

    @pl.when(k == 0)
    def _init():
        # Seed the resident f32 output block with the broadcast bias: the bias
        # add then costs nothing extra and no separate accumulator scratch or
        # epilogue copy is needed.
        o_ref[...] = jnp.broadcast_to(b_ref[...], o_ref.shape)

    # x (TM, TK) bf16  contracted with  w (TN, TK) bf16 along K
    # -> (TM, TN) accumulated in f32 on the MXU.  (Weights stay in PyTorch
    # (D, E) layout; no wrapper-side transpose.)
    o_ref[...] += lax.dot_general(
        x_ref[...], w_ref[...],
        dimension_numbers=(((1,), (1,)), ((), ())),
        preferred_element_type=jnp.float32)


def _round_up(v, m):
    return ((v + m - 1) // m) * m


def prepare_linear_head_params(w, b, *, tn=None, tk=None):
    """One-time weight/bias prep (cast + pad) — hoist this out of the hot path.

    w: (D, E) float32 weight in PyTorch nn.Linear layout
    b: (D,)   float32 bias
    Returns (w_padded_bf16, b_padded_f32, meta).
    """
    D, E = w.shape
    # 256-aligned N/K tiles keep the 2x256x256 MXU (v6e/v7x) full; also fine
    # (a multiple of 128) on v5e's 4x128x128 MXU.
    TN = tn or min(_round_up(D, 256), 1024)
    TK = tk or min(_round_up(E, 256), 2048)
    Np = _round_up(D, TN)
    Kp = _round_up(E, TK)

    wp = jnp.zeros((Np, Kp), jnp.bfloat16).at[:D, :E].set(w.astype(jnp.bfloat16))
    bp = jnp.zeros((1, Np), jnp.float32).at[0, :D].set(b.astype(jnp.float32))
    return wp, bp, (D, E, TN, TK)


def linear_head_apply(x, wp, bp, meta, *, tm=None):
    """y = x @ w.T + b  using pre-prepared (padded, bf16) weights."""
    D, E, TN, TK = meta
    B = x.shape[0]
    assert x.shape[1] == E, "activation inner dim must match embed size"
    Np, Kp = wp.shape

    # M tile: multiple of the bf16 sublane pack (16), covering all of B when it
    # fits, so the weight matrix (the dominant HBM stream) is read exactly once.
    TM = tm or min(_round_up(B, 16), 256)
    Mp = _round_up(B, TM)

    # Pad + cast activations (small for a linear head; weights already prepped).
    xp = jnp.zeros((Mp, Kp), jnp.bfloat16).at[:B, :E].set(x.astype(jnp.bfloat16))

    grid = (Mp // TM, Np // TN, Kp // TK)

    # Generation-aware VMEM budget: ~3/4 of physical (v7x: 64 MiB -> 48 MiB;
    # v5e/v6e: 128 MiB -> capped at 96 MiB), never below 32 MiB.
    try:
        vmem_cap = int(pltpu.get_tpu_info().vmem_capacity_bytes)
    except Exception:
        vmem_cap = 64 * 1024 * 1024
    vmem_limit = max(32 * 1024 * 1024, min((vmem_cap * 3) // 4, 96 * 1024 * 1024))

    # Deeper buffering on the weight stream hides HBM latency jitter when the
    # per-tile MXU work is short (small B); only worth it with >=3 K steps.
    w_spec_kwargs = {}
    if grid[2] >= 3:
        w_spec_kwargs["pipeline_mode"] = pl.Buffered(3)
    w_spec = pl.BlockSpec((TN, TK), lambda i, j, k: (j, k), **w_spec_kwargs)

    cost = pl.CostEstimate(
        flops=2 * Mp * Np * Kp,
        transcendentals=0,
        bytes_accessed=Mp * Kp * 2 + Np * Kp * 2 + Np * 4 + Mp * Np * 4,
    )

    out_padded = pl.pallas_call(
        linear_kernel,
        out_shape=jax.ShapeDtypeStruct((Mp, Np), jnp.float32),
        grid=grid,
        in_specs=[
            pl.BlockSpec((TM, TK), lambda i, j, k: (i, k)),   # activations
            w_spec,                                           # weights (D, E) layout
            pl.BlockSpec((1, TN), lambda i, j, k: (0, j)),    # bias
        ],
        out_specs=pl.BlockSpec((TM, TN), lambda i, j, k: (i, j)),
        compiler_params=pltpu.CompilerParams(
            dimension_semantics=("parallel", "parallel", "arbitrary"),
            vmem_limit_bytes=vmem_limit,
        ),
        cost_estimate=cost,
    )(xp, wp, bp)

    return out_padded[:B, :D].astype(x.dtype)


def linear_head(x, w, b, **kwargs):
    """Convenience wrapper: prep + apply in one call (prefer prepping once)."""
    wp, bp, meta = prepare_linear_head_params(w, b)
    return linear_head_apply(x, wp, bp, meta, **kwargs)


if __name__ == "__main__":
    # Small shapes consistent with the module: batch=8, embed_size=32, dim_out=2
    batch, embed_size, dim_out = 8, 32, 2

    key = jax.random.PRNGKey(0)
    kx, kw, kb = jax.random.split(key, 3)

    x = jax.random.normal(kx, (batch, embed_size), dtype=jnp.float32)

    # Deterministic init mimicking nn.Linear's uniform(-1/sqrt(E), 1/sqrt(E))
    bound = 1.0 / (embed_size ** 0.5)
    w = jax.random.uniform(kw, (dim_out, embed_size), minval=-bound,
                           maxval=bound, dtype=jnp.float32)   # PyTorch (D, E)
    b = jax.random.uniform(kb, (dim_out,), minval=-bound, maxval=bound,
                           dtype=jnp.float32)

    # Weight prep happens once (out of the per-call hot path), then apply.
    wp, bp, meta = prepare_linear_head_params(w, b)
    out = linear_head_apply(x, wp, bp, meta)
    out = jax.block_until_ready(out)

    # Reference in full f32 precision; kernel streams bf16 operands with f32
    # accumulation, so allow bf16-level tolerance.
    ref = jnp.dot(x, w.T, precision=jax.lax.Precision.HIGHEST) + b
    assert out.shape == (batch, dim_out)
    assert jnp.allclose(out, ref, atol=5e-2, rtol=5e-2), (
        f"max abs err {jnp.max(jnp.abs(out - ref))}")

    print("KERNEL_OK")
</pallas_src>

<mosaic_0001>
module attributes {stable_mosaic.version = 11 : i64} {
  func.func @linear_kernel(%arg0: i32, %arg1: i32, %arg2: i32, %arg3: memref<16x256xbf16, #tpu.memory_space<vmem>>, %arg4: memref<256x256xbf16, #tpu.memory_space<vmem>>, %arg5: memref<1x256xf32, #tpu.memory_space<vmem>>, %arg6: memref<16x256xf32, #tpu.memory_space<vmem>>) attributes {dimension_semantics = [#tpu.dimension_semantics<parallel>, #tpu.dimension_semantics<parallel>, #tpu.dimension_semantics<arbitrary>], iteration_bounds = array<i64: 1, 1, 1>, scalar_prefetch = 0 : i64, scratch_operands = 0 : i64, tpu.core_type = #tpu.core_type<tc>, window_params = [{transform_indices = @transform_0, window_bounds = array<i64: 16, 256>}, {transform_indices = @transform_1, window_bounds = array<i64: 256, 256>}, {transform_indices = @transform_2, window_bounds = array<i64: 1, 256>}, {transform_indices = @transform_3, window_bounds = array<i64: 16, 256>}]} {
    %c0_i32 = arith.constant 0 : i32
    %0 = arith.cmpi eq, %arg2, %c0_i32 : i32
    %1 = arith.extui %0 : i1 to i32
    %c0_i32_0 = arith.constant 0 : i32
    %2 = arith.cmpi ne, %1, %c0_i32_0 : i32
    scf.if %2 {
      %c0_8 = arith.constant 0 : index
      %c0_9 = arith.constant 0 : index
      %9 = vector.load %arg5[%c0_8, %c0_9] : memref<1x256xf32, #tpu.memory_space<vmem>>, vector<1x256xf32>
      %10 = vector.shape_cast %9 : vector<1x256xf32> to vector<1x256xf32>
      %11 = vector.broadcast %10 : vector<1x256xf32> to vector<16x256xf32>
      %c0_10 = arith.constant 0 : index
      %c0_11 = arith.constant 0 : index
      %12 = vector.load %arg6[%c0_10, %c0_11] : memref<16x256xf32, #tpu.memory_space<vmem>>, vector<16x256xf32>
      tpu.vector_store %arg6[%c0_10, %c0_11], %11 {strides = array<i32>} : memref<16x256xf32, #tpu.memory_space<vmem>>, vector<16x256xf32>,
    } else {
    }
    %c0 = arith.constant 0 : index
    %c0_1 = arith.constant 0 : index
    %3 = vector.load %arg6[%c0, %c0_1] : memref<16x256xf32, #tpu.memory_space<vmem>>, vector<16x256xf32>
    %c0_2 = arith.constant 0 : index
    %c0_3 = arith.constant 0 : index
    %4 = vector.load %arg3[%c0_2, %c0_3] : memref<16x256xbf16, #tpu.memory_space<vmem>>, vector<16x256xbf16>
    %c0_4 = arith.constant 0 : index
    %c0_5 = arith.constant 0 : index
    %5 = vector.load %arg4[%c0_4, %c0_5] : memref<256x256xbf16, #tpu.memory_space<vmem>>, vector<256x256xbf16>
    %cst = arith.constant dense<0.000000e+00> : vector<16x256xf32>
    %6 = tpu.matmul %4, %5, %cst {dimension_numbers = #tpu.dot_dimension_numbers<[1], [1], [0], [0], [0, 0, 1, 0], [], []>} : vector<16x256xbf16>, vector<256x256xbf16>, vector<16x256xf32> -> vector<16x256xf32>
    %7 = arith.addf %3, %6 : vector<16x256xf32>
    %c0_6 = arith.constant 0 : index
    %c0_7 = arith.constant 0 : index
    %8 = vector.load %arg6[%c0_6, %c0_7] : memref<16x256xf32, #tpu.memory_space<vmem>>, vector<16x256xf32>
    tpu.vector_store %arg6[%c0_6, %c0_7], %7 {strides = array<i32>} : memref<16x256xf32, #tpu.memory_space<vmem>>, vector<16x256xf32>,
    return
  }
  func.func @transform_0(%arg0: i32, %arg1: i32, %arg2: i32) -> (i32, i32) {
    %c0_i32 = arith.constant 0 : i32
    return %arg0, %arg2 : i32, i32
  }
  func.func @transform_1(%arg0: i32, %arg1: i32, %arg2: i32) -> (i32, i32) {
    %c0_i32 = arith.constant 0 : i32
    return %arg1, %arg2 : i32, i32
  }
  func.func @transform_2(%arg0: i32, %arg1: i32, %arg2: i32) -> (i32, i32) {
    %c0_i32 = arith.constant 0 : i32
    %c0_i32_0 = arith.constant 0 : i32
    return %c0_i32, %arg1 : i32, i32
  }
  func.func @transform_3(%arg0: i32, %arg1: i32, %arg2: i32) -> (i32, i32) {
    %c0_i32 = arith.constant 0 : i32
    return %arg0, %arg1 : i32, i32
  }
}

</mosaic_0001>

<bundles_post_ra>
// kernel: tpu_custom_call.1
= control target key start
LH: loop header
LB: loop body
LE: loop exit
PB: predicated region body
PF: predicated region fallthrough
CT: control target
= control target key end

     0   :  { %8 = vsyncpa [#allocation3], 0  ;;  %s570_s0 = inlined_call_operand.hbm [shape: bf16[16,256], index: 0, kind: input, shape index: {}]   ;;  %s571_s1 = inlined_call_operand.hbm [shape: bf16[256,256], index: 1, kind: input, shape index: {}]   ;;  %s572_s2 = inlined_call_operand.vmem [shape: f32[1,256], index: 2, kind: input, shape index: {}]   ;;  %s573_s3 = inlined_call_operand.hbm [shape: f32[16,256], index: 3, kind: output, shape index: {}]  }
   0x1   :  { %9 = vsyncpa [#allocation6], 0 }
   0x2   :  { %10 = vsyncpa [#allocation4], 0  ;;  %s504_s12 = smov [#allocation2]   ;;  %s432_s16 = scalar_lea.hbm %s570_s0, 256 }
   0x3   :  { %s16_s13 = sshll.u32 %s504_s12, 4  ;;  %p433_p0 = scmp.ne.s32.totalorder %s570_s0, %s432_s16  ;;  %s17_s13 = int_to_ptr.vmem [resolvable:$true] %s16_s13 }
   0x4   :  { %p436_p1 = scmp.lt.u32.totalorder %s432_s16, %s570_s0 }
   0x6   :  { %p438_p2 = pnand %p436_p1, %p433_p0 }
   0x8   :  { %441 = shalt.err (!%p438_p2)
}
   0x9   :  { %s442_s21 = scalar_lea.vmem %s17_s13, 256  ;;  %p447_p4 = scmp.lt.s32.totalorder %s17_s13, %s17_s13 }
   0xa   :  { %p443_p3 = scmp.ne.s32.totalorder %s17_s13, %s442_s21  ;;  %p448_p5 = scmp.lt.s32.totalorder %s442_s21, %s442_s21 }
   0xc   :  { %p449_p6 = por %p448_p5, %p447_p4 }
   0xe   :  { %p450_p7 = pnand %p449_p6, %p443_p3 }
  0x10   :  { %453 = shalt.err (!%p450_p7)
}
  0x11   :  { %s505_s22 = smov 128   ;;  %s506_s23 = smov 8  }
  0x12   :  { %22 = dma.hbm_to_vmem [thread:$0]  %s570_s0, 256, %s17_s13, [#allocation3], %s505_s22, %s505_s22, %s506_s23  }
  0x13   :  { %s507_s26 = smov [#allocation5]   ;;  %s454_s30 = scalar_lea.hbm %s571_s1, 4096 }
  0x14   :  { %s28_s27 = sshll.u32 %s507_s26, 4  ;;  %p455_p8 = scmp.ne.s32.totalorder %s571_s1, %s454_s30  ;;  %s29_s27 = int_to_ptr.vmem [resolvable:$true] %s28_s27 }
  0x15   :  { %p458_p9 = scmp.lt.u32.totalorder %s454_s30, %s571_s1 }
  0x17   :  { %p460_p10 = pnand %p458_p9, %p455_p8 }
  0x19   :  { %463 = shalt.err (!%p460_p10)
}
  0x1a   :  { %s464_s8 = scalar_lea.vmem %s29_s27, 4096  ;;  %p469_p12 = scmp.lt.s32.totalorder %s29_s27, %s29_s27 }
  0x1b   :  { %p465_p11 = scmp.ne.s32.totalorder %s29_s27, %s464_s8  ;;  %p470_p13 = scmp.lt.s32.totalorder %s464_s8, %s464_s8 }
  0x1d   :  { %p471_p0 = por %p470_p13, %p469_p12 }
  0x1f   :  { %p472_p1 = pnand %p471_p0, %p465_p11 }
  0x21   :  { %475 = shalt.err (!%p472_p1)
}
  0x22   :  { %34 = dma.hbm_to_vmem [thread:$0]  %s571_s1, 4096, %s29_s27, [#allocation6], %s505_s22, %s505_s22, %s506_s23  }
  0x23   :  { %498 = dma.done.wait [#allocation3], 256  }
  0x24   :  { %499 = vsyncadd [#allocation3], 4294967040 }
  0x25   :  { %500 = dma.done.wait [#allocation6], 4096  }
  0x26   :  { %501 = vsyncadd [#allocation6], 4294963200  ;;  %v381_v0 = vld [vmem:[#allocation5 + $0x4] ss:$8 sps:$4 sm:$0xff]   ;;  %v383_v1 = vld [vmem:[#allocation5] ss:$8 sps:$4 sm:$0xff]   ;;  %v49_v34 = vlaneseq }
  0x27   :  { %271 = vmatprep.subr.bf16.mxu0 %v381_v0  ;;  %v384_v2 = vld [vmem:[#allocation5 + $0x14] ss:$8 sps:$4 sm:$0xff]   ;;  %v386_v3 = vld [vmem:[#allocation5 + $0x10] ss:$8 sps:$4 sm:$0xff]   ;;  %v387_v4 = vld [vmem:[#allocation5 + $0x24] ss:$8 sps:$4 sm:$0xff]  }
  0x28   :  { %272 = vmatpush1.bf16.xpose.msra.mxu0 %v383_v1  ;;  %v389_v5 = vld [vmem:[#allocation5 + $0x20] ss:$8 sps:$4 sm:$0xff]   ;;  %v390_v6 = vld [vmem:[#allocation5 + $0x34] ss:$8 sps:$4 sm:$0xff]   ;;  %v392_v8 = vld [vmem:[#allocation5 + $0x30] ss:$8 sps:$4 sm:$0xff]  }
  0x29   :  { %273 = vmatprep.subr.bf16.mxu0 %v384_v2  ;;  %v431_v7 = vld [vmem:[#allocation2 + $0x4] ss:$8 sps:$4 sm:$0xff]   ;;  %v393_v9 = vld [vmem:[#allocation5 + $0x44] ss:$8 sps:$4 sm:$0xff]   ;;  %v395_v10 = vld [vmem:[#allocation5 + $0x40] ss:$8 sps:$4 sm:$0xff]  }
  0x2a   :  { %303 = vmatprep.mubr.bf16.mxu0 %v431_v7  ;;  %v396_v11 = vld [vmem:[#allocation5 + $0x54] ss:$8 sps:$4 sm:$0xff]   ;;  %v398_v12 = vld [vmem:[#allocation5 + $0x50] ss:$8 sps:$4 sm:$0xff]   ;;  %v399_v13 = vld [vmem:[#allocation5 + $0x64] ss:$8 sps:$4 sm:$0xff]  }
  0x2b   :  { %v401_v14 = vld [vmem:[#allocation5 + $0x60] ss:$8 sps:$4 sm:$0xff]   ;;  %v402_v15 = vld [vmem:[#allocation5 + $0x74] ss:$8 sps:$4 sm:$0xff]   ;;  %v404_v16 = vld [vmem:[#allocation5 + $0x70] ss:$8 sps:$4 sm:$0xff]  }
  0x2c   :  { %v405_v17 = vld [vmem:[#allocation5 + $0x84] ss:$8 sps:$4 sm:$0xff]   ;;  %v407_v18 = vld [vmem:[#allocation5 + $0x80] ss:$8 sps:$4 sm:$0xff]   ;;  %v408_v19 = vld [vmem:[#allocation5 + $0x94] ss:$8 sps:$4 sm:$0xff]  }
  0x2d   :  { %v410_v20 = vld [vmem:[#allocation5 + $0x90] ss:$8 sps:$4 sm:$0xff]   ;;  %v411_v21 = vld [vmem:[#allocation5 + $0xa4] ss:$8 sps:$4 sm:$0xff]   ;;  %v413_v22 = vld [vmem:[#allocation5 + $0xa0] ss:$8 sps:$4 sm:$0xff]  }
  0x2e   :  { %v414_v23 = vld [vmem:[#allocation5 + $0xb4] ss:$8 sps:$4 sm:$0xff]   ;;  %v416_v24 = vld [vmem:[#allocation5 + $0xb0] ss:$8 sps:$4 sm:$0xff]   ;;  %v417_v25 = vld [vmem:[#allocation5 + $0xc4] ss:$8 sps:$4 sm:$0xff]  }
  0x2f   :  { %v419_v26 = vld [vmem:[#allocation5 + $0xc0] ss:$8 sps:$4 sm:$0xff]   ;;  %v420_v27 = vld [vmem:[#allocation5 + $0xd4] ss:$8 sps:$4 sm:$0xff]   ;;  %v422_v28 = vld [vmem:[#allocation5 + $0xd0] ss:$8 sps:$4 sm:$0xff]  }
  0x30   :  { %274 = vmatpush1.bf16.xpose.msra.mxu0 %v386_v3  ;;  %v423_v29 = vld [vmem:[#allocation5 + $0xe4] ss:$8 sps:$4 sm:$0xff]   ;;  %v425_v30 = vld [vmem:[#allocation5 + $0xe0] ss:$8 sps:$4 sm:$0xff]   ;;  %v426_v31 = vld [vmem:[#allocation5 + $0xf4] ss:$8 sps:$4 sm:$0xff]  }
  0x31   :  { %275 = vmatprep.subr.bf16.mxu0 %v387_v4  ;;  %v428_v32 = vld [vmem:[#allocation5 + $0xf0] ss:$8 sps:$4 sm:$0xff]   ;;  %v50_v35 = vshrl.u32 %v49_v34, 7  ;;  %s508_s11 = smov [#allocation7]  }
  0x32   :  { %v429_v33 = vld [vmem:[#allocation2] ss:$8 sps:$4 sm:$0xff]   ;;  %s327_s12 = sshll.u32 %s508_s11, 4  ;;  %s328_s12 = int_to_ptr.vmem [resolvable:$true] %s327_s12 }
  0x33   :  { %v51_v36 = vsub.s32 0, %v50_v35  ;;  %v47_v37 = vld [vmem:[%s572_s2] sm:$0x3]  ;;  %v55_v38 = vsub.s32 1, %v50_v35  ;;  %s476_s13 = scalar_lea.vmem %s328_s12, 512  ;;  %p481_p3 = scmp.lt.s32.totalorder %s328_s12, %s328_s12 }
  0x34   :  { %p477_p2 = scmp.ne.s32.totalorder %s328_s12, %s476_s13  ;;  %p482_p4 = scmp.lt.s32.totalorder %s476_s13, %s476_s13 }
  0x35   :  { %v52_v39 = vrot.slane %v47_v37, %v51_v36  ;;  %v56_v40 = vrot.slane %v47_v37, %v55_v38 }
  0x36   :  { %p483_p5 = por %p482_p4, %p481_p3 }
  0x38   :  { %276 = vmatpush1.bf16.xpose.msra.mxu0 %v389_v5  ;;  %p484_p6 = pnand %p483_p5, %p477_p2 }
  0x39   :  { %277 = vmatprep.subr.bf16.mxu0 %v390_v6 }
  0x40   :  { %278 = vmatpush1.bf16.xpose.msra.mxu0 %v392_v8 }
  0x41   :  { %279 = vmatprep.subr.bf16.mxu0 %v393_v9 }
  0x48   :  { %280 = vmatpush1.bf16.xpose.msra.mxu0 %v395_v10 }
  0x49   :  { %281 = vmatprep.subr.bf16.mxu0 %v396_v11 }
  0x50   :  { %282 = vmatpush1.bf16.xpose.msra.mxu0 %v398_v12 }
  0x51   :  { %283 = vmatprep.subr.bf16.mxu0 %v399_v13 }
  0x58   :  { %284 = vmatpush1.bf16.xpose.msra.mxu0 %v401_v14 }
  0x59   :  { %285 = vmatprep.subr.bf16.mxu0 %v402_v15 }
  0x60   :  { %286 = vmatpush1.bf16.xpose.msra.mxu0 %v404_v16 }
  0x61   :  { %287 = vmatprep.subr.bf16.mxu0 %v405_v17 }
  0x68   :  { %288 = vmatpush1.bf16.xpose.msra.mxu0 %v407_v18 }
  0x69   :  { %289 = vmatprep.subr.bf16.mxu0 %v408_v19 }
  0x70   :  { %290 = vmatpush1.bf16.xpose.msra.mxu0 %v410_v20 }
  0x71   :  { %291 = vmatprep.subr.bf16.mxu0 %v411_v21 }
  0x78   :  { %292 = vmatpush1.bf16.xpose.msra.mxu0 %v413_v22 }
  0x79   :  { %293 = vmatprep.subr.bf16.mxu0 %v414_v23 }
  0x80   :  { %294 = vmatpush1.bf16.xpose.msra.mxu0 %v416_v24 }
  0x81   :  { %295 = vmatprep.subr.bf16.mxu0 %v417_v25 }
  0x88   :  { %296 = vmatpush1.bf16.xpose.msra.mxu0 %v419_v26 }
  0x89   :  { %297 = vmatprep.subr.bf16.mxu0 %v420_v27 }
  0x90   :  { %298 = vmatpush1.bf16.xpose.msra.mxu0 %v422_v28 }
  0x91   :  { %299 = vmatprep.subr.bf16.mxu0 %v423_v29 }
  0x98   :  { %300 = vmatpush1.bf16.xpose.msra.mxu0 %v425_v30 }
  0x99   :  { %301 = vmatprep.subr.bf16.mxu0 %v426_v31 }
  0xa0   :  { %302 = vmatpush1.bf16.xpose.msra.mxu0 %v428_v32 }
  0xa7   :  { %304 = vmatmul.mubr.bf16.vlgmr.msra.gmra.mrb[0].mxu0 %v429_v33 }
 0x17a   :  { %v305_v41 = vpop.f32.mrb[0].mxu0 }
 0x17b   :  { %v314_v42 = vadd.f32 %v305_v41, %v52_v39  ;;  %v307_v43 = vpop.f32.mrb[1].mxu0 }
 0x17c   :  { %v315_v44 = vadd.f32 %v307_v43, %v56_v40  ;;  %v309_v45 = vpop.f32.mrb[2].mxu0 }
 0x17d   :  { %318 = vst [vmem:[#allocation7] sm:$0xff] %v314_v42  ;;  %v316_v46 = vadd.f32 %v309_v45, %v52_v39  ;;  %v311_v47 = vpop.f32.mrb[3].mxu0 }
 0x17e   :  { %319 = vst [vmem:[#allocation7 + $0x8] sm:$0xff] %v315_v44  ;;  %v317_v48 = vadd.f32 %v311_v47, %v56_v40 }
 0x17f   :  { %320 = vst [vmem:[#allocation7 + $0x10] sm:$0xff] %v316_v46 }
 0x180   :  { %321 = vst [vmem:[#allocation7 + $0x18] sm:$0xff] %v317_v48 }
 0x181   :  { %487 = shalt.err (!%p484_p6)
}
 0x182   :  { %s488_s15 = scalar_lea.hbm %s573_s3, 512 }
 0x183   :  { %p489_p7 = scmp.ne.s32.totalorder %s573_s3, %s488_s15  ;;  %p492_p8 = scmp.lt.u32.totalorder %s488_s15, %s573_s3 }
 0x185   :  { %p494_p9 = pnand %p492_p8, %p489_p7 }
 0x187   :  { %497 = shalt.err (!%p494_p9)
}
 0x188   :  { %s509_s20 = smov 256   ;;  %s510_s21 = smov 16  }
 0x189   :  { %333 = dma.vmem_to_hbm [thread:$0]  %s328_s12, 512, %s573_s3, [#allocation4], %s509_s20, %s509_s20, %s510_s21  }
 0x18a   :  { %502 = dma.done.wait [#allocation4], 512  }
 0x18b   :  { %503 = vsyncadd [#allocation4], 4294966784 }
 0x18c   :  { %337 = vsyncpa [#allocation3], 1 }
 0x18d   :  { %338 = vsyncpa [#allocation6], 1 }
 0x18e   :  { %339 = vsyncpa [#allocation4], 1 }

</bundles_post_ra>
